<compile_context>
chip_gen: v7x
topology: tpu7x:2x2x1
jax: 0.10.0
libtpu: 0.0.40
codegen_flags: <defaults>
</compile_context>

<pallas_src>
import functools

import jax
import jax.numpy as jnp
from jax.experimental import pallas as pl
from jax.experimental.pallas import tpu as pltpu


def _pinn_kernel(layer_dims, compute_dtype, x_ref, w_ref, b_ref, out_ref):
    """Feature-major MLP body.

    layer_dims : static tuple of (in_i, out_i) per Linear layer.
    x_ref      : (in_dim, TB) float32 block (batch on the lane axis).
    w_ref      : (L, max_out, max_in) packed weights, already in compute_dtype.
    b_ref      : (L, max_out, 1) packed biases, float32.
    out_ref    : (out_dim, TB) float32 block.
    """
    num_linear = len(layer_dims)
    h = x_ref[...]                                    # (in_dim, TB), f32
    if compute_dtype != jnp.float32:
        h = h.astype(compute_dtype)                   # bf16 MXU operand (v6e/v7x)
    for i, (din, dout) in enumerate(layer_dims):
        w = w_ref[i][:dout, :din]                     # static slice of packed W
        b = b_ref[i][:dout, :]                        # (dout, 1), f32
        # (dout, din) @ (din, TB) -> (dout, TB); f32 accumulation + f32 bias.
        h32 = jnp.dot(w, h, preferred_element_type=jnp.float32) + b
        if i < num_linear - 1:
            if compute_dtype != jnp.float32:
                # bf16 tanh attacks the binding EUP slot (~2x on v6e/v7x) and
                # feeds the next dot directly; accumulation stayed in f32.
                h = jnp.tanh(h32.astype(compute_dtype))
            else:
                h = jnp.tanh(h32)
        else:
            h = h32
    out_ref[...] = h.astype(out_ref.dtype)


def pinn_forward(x, weights, biases, *, block_batch=16384,
                 compute_dtype=jnp.float32,
                 vmem_budget_bytes=40 * 1024 * 1024):
    """Run the PINN MLP forward pass as a single batched Pallas kernel.

    x       : (B, 4) float32
    weights : list of (out_i, in_i) float32 arrays (PyTorch Linear layout)
    biases  : list of (out_i,) float32 arrays
    compute_dtype : jnp.float32 (default; use on v5e) or jnp.bfloat16
                    (recommended on v6e/v7x: bf16 tanh + bf16 MXU operands,
                    f32 accumulation; expect ~1e-2 level deviation from f32).
    returns : (B, 2) float32
    """
    assert len(weights) == len(biases)
    compute_dtype = jnp.dtype(compute_dtype)
    num_linear = len(weights)
    B, in_dim = x.shape
    out_dim = int(weights[-1].shape[0])
    layer_dims = tuple((int(w.shape[1]), int(w.shape[0])) for w in weights)
    max_in = max(d[0] for d in layer_dims)
    max_out = max(d[1] for d in layer_dims)

    # ---- batch tile selection -------------------------------------------
    tb = max(128, (int(block_batch) // 128) * 128)

    def _vmem_estimate(t):
        pad8 = lambda n: -(-n // 8) * 8
        io = 2 * (pad8(in_dim) + pad8(out_dim)) * t * 4      # dbl-buffered x/out blocks
        acts = 6 * pad8(max_out) * t * 4                      # generous live-activation bound
        return io + acts

    # Cap for VMEM (v7x: 64 MiB physical, 32 MiB scoped default).
    while tb > 128 and _vmem_estimate(tb) > vmem_budget_bytes:
        tb = max(128, ((tb // 2) // 128) * 128)

    padded_b_min = pl.cdiv(B, 128) * 128
    if padded_b_min >= 256:
        # Keep >= 2 blocks so ("parallel",) can use both v7x TensorCores.
        tb = min(tb, ((padded_b_min // 2) // 128) * 128)
    tb = min(tb, padded_b_min)
    padded_b = pl.cdiv(B, tb) * tb
    grid = (padded_b // tb,)

    # ---- feature-major input (batch on lanes), padded to the tile --------
    x_t = jnp.pad(x.astype(jnp.float32).T, ((0, 0), (0, padded_b - B)))

    # ---- pack parameters: 2 VMEM-resident inputs instead of 2*L ----------
    w_packed = jnp.zeros((num_linear, max_out, max_in), compute_dtype)
    b_packed = jnp.zeros((num_linear, max_out, 1), jnp.float32)
    for i, (w, b) in enumerate(zip(weights, biases)):
        w_packed = w_packed.at[i, :w.shape[0], :w.shape[1]].set(
            w.astype(compute_dtype))
        b_packed = b_packed.at[i, :b.shape[0], 0].set(
            b.reshape(-1).astype(jnp.float32))

    in_specs = [
        pl.BlockSpec((in_dim, tb), lambda i: (0, i)),
        pl.BlockSpec(w_packed.shape, lambda i: (0, 0, 0)),   # resident in VMEM
        pl.BlockSpec(b_packed.shape, lambda i: (0, 0, 0)),   # resident in VMEM
    ]

    flops = 2 * padded_b * sum(din * dout for din, dout in layer_dims)
    transcendentals = padded_b * sum(d[1] for d in layer_dims[:-1])
    param_bytes = int(w_packed.size) * w_packed.dtype.itemsize \
        + int(b_packed.size) * b_packed.dtype.itemsize
    bytes_accessed = int(x_t.size) * 4 + padded_b * out_dim * 4 + param_bytes

    kernel = functools.partial(_pinn_kernel, layer_dims, compute_dtype)

    out_t = pl.pallas_call(
        kernel,
        out_shape=jax.ShapeDtypeStruct((out_dim, padded_b), jnp.float32),
        grid=grid,
        in_specs=in_specs,
        out_specs=pl.BlockSpec((out_dim, tb), lambda i: (0, i)),
        compiler_params=pltpu.CompilerParams(
            dimension_semantics=("parallel",),
            vmem_limit_bytes=48 * 1024 * 1024),
        cost_estimate=pl.CostEstimate(
            flops=int(flops),
            transcendentals=int(transcendentals),
            bytes_accessed=int(bytes_accessed)),
    )(x_t, w_packed, b_packed)

    # Slice padding off BEFORE the (tiny) transpose back to (B, out_dim).
    return out_t[:, :B].T


def init_pinn_params(key, hidden_dim, num_layers, in_dim=4, out_dim=2):
    """Deterministic init mimicking PyTorch's default Linear init
    (uniform(-1/sqrt(fan_in), 1/sqrt(fan_in))).  Weights (out, in), biases (out,)."""
    dims = [in_dim] + [hidden_dim] * num_layers + [out_dim]
    weights, biases = [], []
    for i in range(len(dims) - 1):
        fan_in, fan_out = dims[i], dims[i + 1]
        key, kw, kb = jax.random.split(key, 3)
        bound = 1.0 / jnp.sqrt(jnp.float32(fan_in))
        w = jax.random.uniform(kw, (fan_out, fan_in), jnp.float32, -bound, bound)
        b = jax.random.uniform(kb, (fan_out,), jnp.float32, -bound, bound)
        weights.append(w)
        biases.append(b)
    return weights, biases


def pinn_reference(x, weights, biases):
    """Pure-JAX reference matching the PyTorch module semantics."""
    h = x
    n = len(weights)
    for i, (w, b) in enumerate(zip(weights, biases)):
        h = h @ w.T + b.reshape(1, -1)
        if i < n - 1:
            h = jnp.tanh(h)
    return h


if __name__ == "__main__":
    hidden_dim = 32
    num_layers = 3

    key = jax.random.PRNGKey(0)
    key, kx1, kx2, kx3 = jax.random.split(key, 4)
    weights, biases = init_pinn_params(key, hidden_dim, num_layers)

    # Case 1: tiny batch (single block), f32 path.
    x1 = jax.random.normal(kx1, (8, 4), jnp.float32)
    out1 = jax.block_until_ready(pinn_forward(x1, weights, biases))
    ref1 = pinn_reference(x1, weights, biases)
    assert out1.shape == (8, 2), out1.shape
    assert jnp.allclose(out1, ref1, atol=1e-5, rtol=1e-5), (
        f"max abs err {jnp.max(jnp.abs(out1 - ref1))}")

    # Case 2: batch not divisible by the block -> grid>1 + padding, f32 path.
    x2 = jax.random.normal(kx2, (300, 4), jnp.float32)
    out2 = jax.block_until_ready(
        pinn_forward(x2, weights, biases, block_batch=128))
    ref2 = pinn_reference(x2, weights, biases)
    assert out2.shape == (300, 2), out2.shape
    assert jnp.allclose(out2, ref2, atol=1e-5, rtol=1e-5), (
        f"max abs err {jnp.max(jnp.abs(out2 - ref2))}")

    # Case 3: default (large) tile split across >=2 blocks + bf16 activation /
    # tanh policy recommended for v6e/v7x (runs, just without speedup, on v5e).
    x3 = jax.random.normal(kx3, (4096, 4), jnp.float32)
    out3 = jax.block_until_ready(
        pinn_forward(x3, weights, biases, compute_dtype=jnp.bfloat16))
    ref3 = pinn_reference(x3, weights, biases)
    assert out3.shape == (4096, 2), out3.shape
    assert jnp.allclose(out3, ref3, atol=5e-2, rtol=5e-2), (
        f"max abs err {jnp.max(jnp.abs(out3 - ref3))}")

    print("KERNEL_OK")
</pallas_src>

<mosaic_0001>
module attributes {stable_mosaic.version = 11 : i64} {
  func.func @_pinn_kernel(%arg0: i32, %arg1: memref<4x128xf32, #tpu.memory_space<vmem>>, %arg2: memref<4x32x32xf32, #tpu.memory_space<vmem>>, %arg3: memref<4x32x1xf32, #tpu.memory_space<vmem>>, %arg4: memref<2x128xf32, #tpu.memory_space<vmem>>) attributes {dimension_semantics = [#tpu.dimension_semantics<parallel>], iteration_bounds = array<i64: 1>, scalar_prefetch = 0 : i64, scratch_operands = 0 : i64, tpu.core_type = #tpu.core_type<tc>, window_params = [{transform_indices = @transform_0, window_bounds = array<i64: 4, 128>}, {pipeline_mode = #tpu.pipeline_mode<synchronous>, transform_indices = @transform_1, window_bounds = array<i64: 4, 32, 32>}, {pipeline_mode = #tpu.pipeline_mode<synchronous>, transform_indices = @transform_2, window_bounds = array<i64: 4, 32, 1>}, {transform_indices = @transform_3, window_bounds = array<i64: 2, 128>}]} {
    %c0 = arith.constant 0 : index
    %c0_0 = arith.constant 0 : index
    %0 = vector.load %arg1[%c0, %c0_0] : memref<4x128xf32, #tpu.memory_space<vmem>>, vector<4x128xf32>
    %c0_1 = arith.constant 0 : index
    %c0_2 = arith.constant 0 : index
    %c0_3 = arith.constant 0 : index
    %1 = vector.load %arg2[%c0_1, %c0_2, %c0_3] : memref<4x32x32xf32, #tpu.memory_space<vmem>>, vector<1x32x32xf32>
    %2 = vector.shape_cast %1 : vector<1x32x32xf32> to vector<32x32xf32>
    %3 = vector.extract_strided_slice %2 {offsets = [0, 0], sizes = [32, 4], strides = [1, 1]} : vector<32x32xf32> to vector<32x4xf32>
    %c0_4 = arith.constant 0 : index
    %c0_5 = arith.constant 0 : index
    %c0_6 = arith.constant 0 : index
    %4 = vector.load %arg3[%c0_4, %c0_5, %c0_6] : memref<4x32x1xf32, #tpu.memory_space<vmem>>, vector<1x32x1xf32>
    %5 = vector.shape_cast %4 : vector<1x32x1xf32> to vector<32x1xf32>
    %cst = arith.constant dense<0.000000e+00> : vector<32x128xf32>
    %6 = tpu.matmul %3, %0, %cst {dimension_numbers = #tpu.dot_dimension_numbers<[1], [0], [0], [1], [0, 0, 1, 1], [], []>} : vector<32x4xf32>, vector<4x128xf32>, vector<32x128xf32> -> vector<32x128xf32>
    %7 = vector.broadcast %5 : vector<32x1xf32> to vector<32x128xf32>
    %8 = arith.addf %6, %7 : vector<32x128xf32>
    %9 = math.tanh %8 : vector<32x128xf32>
    %c1 = arith.constant 1 : index
    %c0_7 = arith.constant 0 : index
    %c0_8 = arith.constant 0 : index
    %10 = vector.load %arg2[%c1, %c0_7, %c0_8] : memref<4x32x32xf32, #tpu.memory_space<vmem>>, vector<1x32x32xf32>
    %11 = vector.shape_cast %10 : vector<1x32x32xf32> to vector<32x32xf32>
    %c1_9 = arith.constant 1 : index
    %c0_10 = arith.constant 0 : index
    %c0_11 = arith.constant 0 : index
    %12 = vector.load %arg3[%c1_9, %c0_10, %c0_11] : memref<4x32x1xf32, #tpu.memory_space<vmem>>, vector<1x32x1xf32>
    %13 = vector.shape_cast %12 : vector<1x32x1xf32> to vector<32x1xf32>
    %cst_12 = arith.constant dense<0.000000e+00> : vector<32x128xf32>
    %14 = tpu.matmul %11, %9, %cst_12 {dimension_numbers = #tpu.dot_dimension_numbers<[1], [0], [0], [1], [0, 0, 1, 1], [], []>} : vector<32x32xf32>, vector<32x128xf32>, vector<32x128xf32> -> vector<32x128xf32>
    %15 = vector.broadcast %13 : vector<32x1xf32> to vector<32x128xf32>
    %16 = arith.addf %14, %15 : vector<32x128xf32>
    %17 = math.tanh %16 : vector<32x128xf32>
    %c2 = arith.constant 2 : index
    %c0_13 = arith.constant 0 : index
    %c0_14 = arith.constant 0 : index
    %18 = vector.load %arg2[%c2, %c0_13, %c0_14] : memref<4x32x32xf32, #tpu.memory_space<vmem>>, vector<1x32x32xf32>
    %19 = vector.shape_cast %18 : vector<1x32x32xf32> to vector<32x32xf32>
    %c2_15 = arith.constant 2 : index
    %c0_16 = arith.constant 0 : index
    %c0_17 = arith.constant 0 : index
    %20 = vector.load %arg3[%c2_15, %c0_16, %c0_17] : memref<4x32x1xf32, #tpu.memory_space<vmem>>, vector<1x32x1xf32>
    %21 = vector.shape_cast %20 : vector<1x32x1xf32> to vector<32x1xf32>
    %cst_18 = arith.constant dense<0.000000e+00> : vector<32x128xf32>
    %22 = tpu.matmul %19, %17, %cst_18 {dimension_numbers = #tpu.dot_dimension_numbers<[1], [0], [0], [1], [0, 0, 1, 1], [], []>} : vector<32x32xf32>, vector<32x128xf32>, vector<32x128xf32> -> vector<32x128xf32>
    %23 = vector.broadcast %21 : vector<32x1xf32> to vector<32x128xf32>
    %24 = arith.addf %22, %23 : vector<32x128xf32>
    %25 = math.tanh %24 : vector<32x128xf32>
    %c3 = arith.constant 3 : index
    %c0_19 = arith.constant 0 : index
    %c0_20 = arith.constant 0 : index
    %26 = vector.load %arg2[%c3, %c0_19, %c0_20] : memref<4x32x32xf32, #tpu.memory_space<vmem>>, vector<1x32x32xf32>
    %27 = vector.shape_cast %26 : vector<1x32x32xf32> to vector<32x32xf32>
    %28 = vector.extract_strided_slice %27 {offsets = [0, 0], sizes = [2, 32], strides = [1, 1]} : vector<32x32xf32> to vector<2x32xf32>
    %c3_21 = arith.constant 3 : index
    %c0_22 = arith.constant 0 : index
    %c0_23 = arith.constant 0 : index
    %29 = vector.load %arg3[%c3_21, %c0_22, %c0_23] : memref<4x32x1xf32, #tpu.memory_space<vmem>>, vector<1x32x1xf32>
    %30 = vector.shape_cast %29 : vector<1x32x1xf32> to vector<32x1xf32>
    %31 = vector.extract_strided_slice %30 {offsets = [0, 0], sizes = [2, 1], strides = [1, 1]} : vector<32x1xf32> to vector<2x1xf32>
    %cst_24 = arith.constant dense<0.000000e+00> : vector<2x128xf32>
    %32 = tpu.matmul %28, %25, %cst_24 {dimension_numbers = #tpu.dot_dimension_numbers<[1], [0], [0], [1], [0, 0, 1, 1], [], []>} : vector<2x32xf32>, vector<32x128xf32>, vector<2x128xf32> -> vector<2x128xf32>
    %33 = vector.broadcast %31 : vector<2x1xf32> to vector<2x128xf32>
    %34 = arith.addf %32, %33 : vector<2x128xf32>
    %c0_25 = arith.constant 0 : index
    %c0_26 = arith.constant 0 : index
    %35 = vector.load %arg4[%c0_25, %c0_26] : memref<2x128xf32, #tpu.memory_space<vmem>>, vector<2x128xf32>
    tpu.vector_store %arg4[%c0_25, %c0_26], %34 {strides = array<i32>} : memref<2x128xf32, #tpu.memory_space<vmem>>, vector<2x128xf32>,
    return
  }
  func.func @transform_0(%arg0: i32) -> (i32, i32) {
    %c0_i32 = arith.constant 0 : i32
    %c0_i32_0 = arith.constant 0 : i32
    return %c0_i32, %arg0 : i32, i32
  }
  func.func @transform_1(%arg0: i32) -> (i32, i32, i32) {
    %c0_i32 = arith.constant 0 : i32
    %c0_i32_0 = arith.constant 0 : i32
    %c0_i32_1 = arith.constant 0 : i32
    %c0_i32_2 = arith.constant 0 : i32
    return %c0_i32, %c0_i32_0, %c0_i32_1 : i32, i32, i32
  }
  func.func @transform_2(%arg0: i32) -> (i32, i32, i32) {
    %c0_i32 = arith.constant 0 : i32
    %c0_i32_0 = arith.constant 0 : i32
    %c0_i32_1 = arith.constant 0 : i32
    %c0_i32_2 = arith.constant 0 : i32
    return %c0_i32, %c0_i32_0, %c0_i32_1 : i32, i32, i32
  }
  func.func @transform_3(%arg0: i32) -> (i32, i32) {
    %c0_i32 = arith.constant 0 : i32
    %c0_i32_0 = arith.constant 0 : i32
    return %c0_i32, %arg0 : i32, i32
  }
}

</mosaic_0001>

<bundles_post_ra>
// kernel: tpu_custom_call.1
= control target key start
LH: loop header
LB: loop body
LE: loop exit
PB: predicated region body
PF: predicated region fallthrough
CT: control target
= control target key end

     0   :  { %vm57_vm0 = vcmask 1043456   ;;  %vm44_vm1 = vcmask 31744   ;;  %v692_v5 = vmov 0   ;;  %s823_s0 = inlined_call_operand.vmem [shape: f32[4,128], index: 0, kind: input, shape index: {}]   ;;  %s824_s1 = inlined_call_operand.vmem [shape: f32[4,32,32], index: 1, kind: input, shape index: {}]   ;;  %s825_s2 = inlined_call_operand.vmem [shape: f32[4,32,1], index: 2, kind: input, shape index: {}]   ;;  %s826_s3 = inlined_call_operand.hbm [shape: f32[2,128], index: 3, kind: output, shape index: {}]  }
   0x1   :  { %v15_v0 = vld [vmem:[%s823_s0] sm:$0xf]  ;;  %v17_v2 = vld [vmem:[%s824_s1 + $0x8] sm:$0xff]  ;;  %v18_v3 = vld [vmem:[%s824_s1 + $0x10] sm:$0xff]  ;;  %642 = vset.pattern.permute.xlu0 %v692_v5  ;;  %643 = vset.pattern.permute.xlu1 %v692_v5 }
   0x2   :  { %v16_v1 = vld [vmem:[%s824_s1] sm:$0xff]  ;;  %568 = vmatprep.subr.msk.mxu0 %vm57_vm0, %v15_v0  ;;  %v22_v6 = vld [vmem:[%s825_s2 + $0x10] sm:$0xff]  ;;  %v19_v7 = vld [vmem:[%s824_s1 + $0x18] sm:$0xff] }
   0x3   :  { %570 = vmatprep.mubr.msk.f32.mxu0 %vm44_vm1, %v16_v1  ;;  %v20_v4 = vld [vmem:[%s825_s2] sm:$0xff]  ;;  %569 = vmatpush3.msk.msra.mxu0 %vm57_vm0, %v15_v0  ;;  %v21_v8 = vld [vmem:[%s825_s2 + $0x8] sm:$0xff]  ;;  %v23_v9 = vld [vmem:[%s825_s2 + $0x18] sm:$0xff] }
   0x4   :  { %571 = vmatmul.mubr.msk.f32.vlgmr.msra.gmra.mrb[0].mxu0 %vm44_vm1, %v17_v2  ;;  %26 = vperm.xlu0 %642, %v20_v4  }
   0x5   :  { %573 = vmatprep.mubr.msk.f32.mxu0 %vm44_vm1, %v18_v3  ;;  %36 = vperm.xlu1 %643, %v22_v6  }
   0x6   :  { %8 = vsyncpa [#allocation3], 0  ;;  %v519_v10 = vld [vmem:[%s825_s2 + $0x20] sm:$0xff]  ;;  %v520_v11 = vld [vmem:[%s825_s2 + $0x28] sm:$0xff]  ;;  %vm180_vm2 = vcmask 261120   ;;  %v693_v63 = vmov 0.0|0.0  }
   0x7   :  { %v521_v12 = vld [vmem:[%s825_s2 + $0x30] sm:$0xff]  ;;  %v522_v13 = vld [vmem:[%s825_s2 + $0x38] sm:$0xff]  ;;  %v531_v14 = vld [vmem:[%s825_s2 + $0x40] sm:$0xff]  ;;  %vm694_vm3 = vmmov 0   ;;  %v695_v0 = vmov 0.0   ;;  %s696_s9 = smov [#allocation2]  }
   0x8   :  { %574 = vmatmul.mubr.msk.f32.gmra.mrb[2].mxu0 %vm44_vm1, %v19_v7  ;;  %31 = vperm.xlu0 %642, %v21_v8   ;;  %v532_v15 = vld [vmem:[%s825_s2 + $0x48] sm:$0xff]  ;;  %v533_v16 = vld [vmem:[%s825_s2 + $0x50] sm:$0xff]  ;;  %v534_v17 = vld [vmem:[%s825_s2 + $0x58] sm:$0xff]  ;;  %s502_s10 = sshll.u32 %s696_s9, 4  ;;  %s503_s10 = int_to_ptr.vmem [resolvable:$true] %s502_s10 }
   0x9   :  { %41 = vperm.xlu1 %643, %v23_v9   ;;  %v540_v18 = vld [vmem:[%s825_s2 + $0x60] sm:$0xff]  ;;  %v516_v38 = vld [vmem:[%s824_s1 + $0x28] sm:$0xff]  ;;  %v517_v39 = vld [vmem:[%s824_s1 + $0x30] sm:$0xff]  ;;  %s668_s11 = scalar_lea.vmem %s503_s10, 32  ;;  %p673_p1 = scmp.lt.s32.totalorder %s503_s10, %s503_s10 }
   0xa   :  { %v515_v19 = vld [vmem:[%s824_s1 + $0x20] sm:$0xff]  ;;  %v518_v40 = vld [vmem:[%s824_s1 + $0x38] sm:$0xff]  ;;  %v528_v60 = vld [vmem:[%s824_s1 + $0x48] sm:$0xff]  ;;  %p669_p0 = scmp.ne.s32.totalorder %s503_s10, %s668_s11  ;;  %p674_p2 = scmp.lt.s32.totalorder %s668_s11, %s668_s11 }
   0xb   :  { %584 = vmatprep.mubr.msk.f32.mxu1 %vm180_vm2, %v515_v19  ;;  %v527_v41 = vld [vmem:[%s824_s1 + $0x40] sm:$0xff]  ;;  %v529_v61 = vld [vmem:[%s824_s1 + $0x50] sm:$0xff]  ;;  %v530_v62 = vld [vmem:[%s824_s1 + $0x58] sm:$0xff] }
   0xc   :  { %162 = vperm.xlu0 %642, %v519_v10   ;;  %598 = vmatprep.mubr.msk.f32.mxu0 %vm180_vm2, %v527_v41  ;;  %v539_v19 = vld [vmem:[%s824_s1 + $0x60] sm:$0xff]  ;;  %p675_p3 = por %p674_p2, %p673_p1 }
   0xd   :  { %167 = vperm.xlu1 %643, %v520_v11  }
   0xe   :  { %p676_p4 = pnand %p675_p3, %p669_p0 }
  0x10   :  { %172 = vperm.xlu0 %642, %v521_v12  }
  0x11   :  { %177 = vperm.xlu1 %643, %v522_v13  }
  0x14   :  { %294 = vperm.xlu0 %642, %v531_v14  }
  0x15   :  { %299 = vperm.xlu1 %643, %v532_v15  }
  0x18   :  { %304 = vperm.xlu0 %642, %v533_v16  }
  0x19   :  { %309 = vperm.xlu1 %643, %v534_v17  }
  0x1c   :  { %419 = vperm.xlu0 %642, %v540_v18  }
  0x83   :  { %v27_v20 = vpop.permute.xlu0 %26 }
  0x84   :  { %v37_v21 = vpop.permute.xlu1 %36 }
  0x87   :  { %v32_v22 = vpop.permute.xlu0 %31 }
  0x88   :  { %v42_v27 = vpop.permute.xlu1 %41 }
  0x8b   :  { %v163_v43 = vpop.permute.xlu0 %162 }
  0x8c   :  { %v168_v42 = vpop.permute.xlu1 %167 }
  0x8f   :  { %v173_v50 = vpop.permute.xlu0 %172 }
  0x90   :  { %v178_v48 = vpop.permute.xlu1 %177 }
  0x93   :  { %v295_v2 = vpop.permute.xlu0 %294 }
  0x94   :  { %v300_v1 = vpop.permute.xlu1 %299 }
  0x97   :  { %v305_v9 = vpop.permute.xlu0 %304 }
  0x98   :  { %v310_v7 = vpop.permute.xlu1 %309 }
  0xd7   :  { %v572_v23 = vpop.f32.mrb[0].mxu0 }
  0xd8   :  { %v133_v24 = vadd.f32 %v572_v23, %v32_v22  ;;  %v127_v25 = vpop.f32.mrb[1].mxu0 }
  0xd9   :  { %v128_v26 = vadd.f32 %v127_v25, %v27_v20  ;;  %v420_v20 = vpop.permute.xlu0 %419 }
  0xda   :  { %644 = vtanh.f32 %v133_v24 }
  0xdb   :  { %646 = vtanh.f32 %v128_v26  ;;  %v575_v28 = vpop.f32.mrb[2].mxu0 }
  0xdc   :  { %v143_v29 = vadd.f32 %v575_v28, %v42_v27  ;;  %v137_v30 = vpop.f32.mrb[3].mxu0 }
  0xdd   :  { %v138_v31 = vadd.f32 %v137_v30, %v37_v21 }
  0xde   :  { %648 = vtanh.f32 %v143_v29 }
  0xdf   :  { %650 = vtanh.f32 %v138_v31 }
  0xe4   :  { %v645_v32 = vpop.eup %644 }
  0xe5   :  { %v647_v33 = vpop.eup %646 }
  0xe6   :  { %v615_v34 = vpack.c.bf16 %v645_v32, %v647_v33 }
  0xe8   :  { %v649_v35 = vpop.eup %648  ;;  %616 = vmatprep.subr.bf16.mxu1 %v615_v34 }
  0xe9   :  { %v651_v36 = vpop.eup %650  ;;  %618 = vmatpush3.bf16.msra.mxu1 %v615_v34 }
  0xea   :  { %v619_v37 = vpack.c.bf16 %v649_v35, %v651_v36 }
  0xec   :  { %620 = vmatprep.subr.bf16.mxu1 %v619_v37 }
  0xed   :  { %622 = vmatpush3.bf16.msra.mxu1 %v619_v37 }
  0xee   :  { %631 = vmatprep.subr.bf16.mxu1 %v693_v63 }
  0xf0   :  { %585 = vmatmul.mubr.msk.f32.vlgmr.msra.gmra.mrb[0].mxu1 %vm180_vm2, %v516_v38 }
  0xf1   :  { %587 = vmatprep.mubr.msk.f32.mxu1 %vm180_vm2, %v517_v39 }
  0xf4   :  { %588 = vmatmul.mubr.msk.f32.gmra.mrb[2].mxu1 %vm180_vm2, %v518_v40 }
  0xf5   :  { %612 = vmatprep.mubr.msk.f32.mxu1 %vm694_vm3, %v695_v0 }
 0x1c3   :  { %v586_v44 = vpop.f32.mrb[0].mxu1 }
 0x1c4   :  { %v265_v45 = vadd.f32 %v586_v44, %v168_v42  ;;  %v259_v46 = vpop.f32.mrb[1].mxu1 }
 0x1c5   :  { %v260_v47 = vadd.f32 %v259_v46, %v163_v43 }
 0x1c6   :  { %652 = vtanh.f32 %v265_v45 }
 0x1c7   :  { %654 = vtanh.f32 %v260_v47  ;;  %v589_v49 = vpop.f32.mrb[2].mxu1 }
 0x1c8   :  { %v275_v51 = vadd.f32 %v589_v49, %v178_v48  ;;  %v269_v52 = vpop.f32.mrb[3].mxu1 }
 0x1c9   :  { %v270_v53 = vadd.f32 %v269_v52, %v173_v50 }
 0x1ca   :  { %656 = vtanh.f32 %v275_v51 }
 0x1cb   :  { %658 = vtanh.f32 %v270_v53 }
 0x1d0   :  { %v653_v54 = vpop.eup %652 }
 0x1d1   :  { %v655_v55 = vpop.eup %654 }
 0x1d2   :  { %v623_v56 = vpack.c.bf16 %v653_v54, %v655_v55 }
 0x1d4   :  { %v657_v57 = vpop.eup %656  ;;  %624 = vmatprep.subr.bf16.mxu0 %v623_v56 }
 0x1d5   :  { %v659_v58 = vpop.eup %658  ;;  %626 = vmatpush3.bf16.msra.mxu0 %v623_v56 }
 0x1d6   :  { %v627_v59 = vpack.c.bf16 %v657_v57, %v659_v58 }
 0x1d8   :  { %628 = vmatprep.subr.bf16.mxu0 %v627_v59 }
 0x1d9   :  { %630 = vmatpush3.bf16.msra.mxu0 %v627_v59 }
 0x1dc   :  { %599 = vmatmul.mubr.msk.f32.vlgmr.msra.gmra.mrb[4].mxu0 %vm180_vm2, %v528_v60 }
 0x1dd   :  { %601 = vmatprep.mubr.msk.f32.mxu0 %vm180_vm2, %v529_v61 }
 0x1e0   :  { %602 = vmatmul.mubr.msk.f32.gmra.mrb[6].mxu0 %vm180_vm2, %v530_v62 }
 0x2af   :  { %v600_v3 = vpop.f32.mrb[4].mxu0 }
 0x2b0   :  { %v396_v4 = vadd.f32 %v600_v3, %v300_v1  ;;  %v390_v5 = vpop.f32.mrb[5].mxu0 }
 0x2b1   :  { %v391_v6 = vadd.f32 %v390_v5, %v295_v2 }
 0x2b2   :  { %660 = vtanh.f32 %v396_v4 }
 0x2b3   :  { %662 = vtanh.f32 %v391_v6  ;;  %v603_v8 = vpop.f32.mrb[6].mxu0 }
 0x2b4   :  { %v406_v10 = vadd.f32 %v603_v8, %v310_v7  ;;  %v400_v11 = vpop.f32.mrb[7].mxu0 }
 0x2b5   :  { %v401_v12 = vadd.f32 %v400_v11, %v305_v9 }
 0x2b6   :  { %664 = vtanh.f32 %v406_v10 }
 0x2b7   :  { %666 = vtanh.f32 %v401_v12 }
 0x2bc   :  { %v661_v13 = vpop.eup %660 }
 0x2bd   :  { %v663_v14 = vpop.eup %662 }
 0x2be   :  { %v632_v15 = vpack.c.bf16 %v661_v13, %v663_v14 }
 0x2c0   :  { %v665_v16 = vpop.eup %664  ;;  %633 = vmatpush3.bf16.msra.mxu1 %v632_v15 }
 0x2c1   :  { %v667_v17 = vpop.eup %666  ;;  %634 = vmatprep.subr.bf16.mxu1 %v693_v63 }
 0x2c2   :  { %v635_v18 = vpack.c.bf16 %v665_v16, %v667_v17 }
 0x2c4   :  { %636 = vmatpush3.bf16.msra.mxu1 %v635_v18 }
 0x2c7   :  { %613 = vmatmul.mubr.msk.f32.vlgmr.msra.gmra.mrb[4].mxu1 %vm180_vm2, %v539_v19 }
 0x39a   :  { %v491_v21 = vpop.f32.mrb[4].mxu1 }
 0x39b   :  { %v492_v22 = vadd.f32 %v491_v21, %v420_v20  ;;  %v614_v23 = vpop.f32.mrb[5].mxu1 }
 0x39d   :  { %495 = vst [vmem:[#allocation2] sm:$0x3] %v492_v22 }
 0x39e   :  { %679 = shalt.err (!%p676_p4)
}
 0x39f   :  { %s680_s1 = scalar_lea.hbm %s826_s3, 32 }
 0x3a0   :  { %p681_p5 = scmp.ne.s32.totalorder %s826_s3, %s680_s1  ;;  %p684_p6 = scmp.lt.u32.totalorder %s680_s1, %s826_s3 }
 0x3a2   :  { %p686_p7 = pnand %p684_p6, %p681_p5 }
 0x3a4   :  { %689 = shalt.err (!%p686_p7)
}
 0x3a5   :  { %505 = dma.vmem_to_hbm [thread:$0]  %s503_s10, 32, %s826_s3, [#allocation3]  }
 0x3a6   :  { %690 = dma.done.wait [#allocation3], 32  }
 0x3a7   :  { %691 = vsyncadd [#allocation3], 4294967264 }
 0x3a8   :  { %509 = vsyncpa [#allocation3], 1 }

</bundles_post_ra>
